<compile_context>
chip_gen: v7x
topology: tpu7x:2x2x1
jax: 0.10.0
libtpu: 0.0.40
codegen_flags: <defaults>
</compile_context>

<pallas_src>
import functools
import math

import jax
import jax.numpy as jnp
from jax.experimental import pallas as pl
from jax.experimental.pallas import tpu as pltpu


# ----------------------------- in-kernel helpers -----------------------------

def _layer_norm(x, g, b, eps):
    mu = jnp.mean(x, axis=-1, keepdims=True)
    xc = x - mu
    var = jnp.mean(xc * xc, axis=-1, keepdims=True)
    return xc * jax.lax.rsqrt(var + eps) * g + b


def _bf16_matmul(x, w_ref, b):
    """x @ w + b with bf16 MXU operands and f32 accumulation; bias in f32."""
    y = jnp.dot(x.astype(jnp.bfloat16), w_ref[...].astype(jnp.bfloat16),
                preferred_element_type=jnp.float32)
    return y + b


# ----------------------------- Pallas kernels --------------------------------

def _gpt2_block_kernel(hidden_ref, mask_ref, ln_ref,
                       attn_w_ref, attn_b_ref, proj_w_ref, proj_b_ref,
                       fc_w_ref, fc_b_ref, mproj_w_ref, mproj_b_ref,
                       out_ref, k_out_ref, v_out_ref,
                       *, n_head, eps):
    x = hidden_ref[0]                                   # (S, D) f32
    S, D = x.shape
    Dh = D // n_head
    scale = 1.0 / math.sqrt(Dh)

    ln_p = ln_ref[...]                                  # (4, D): g1, b1, g2, b2
    mask = mask_ref[...] != 0.0                         # (S, S) causal (1=keep)

    # ---- attention sub-block ----
    a_in = _layer_norm(x, ln_p[0:1], ln_p[1:2], eps)
    qkv = _bf16_matmul(a_in, attn_w_ref, attn_b_ref[...])   # (S, 3D) f32
    q = qkv[:, 0:D]
    k = qkv[:, D:2 * D]
    v = qkv[:, 2 * D:3 * D]
    k_out_ref[0] = k.astype(k_out_ref.dtype)            # lane-dense (S, D)
    v_out_ref[0] = v.astype(v_out_ref.dtype)

    head_outs = []
    for h in range(n_head):                             # static unrolled loop
        sl = slice(h * Dh, (h + 1) * Dh)
        qh = q[:, sl].astype(jnp.bfloat16)
        kh = k[:, sl].astype(jnp.bfloat16)
        vh = v[:, sl].astype(jnp.bfloat16)
        # scores = qh @ kh.T (contract on Dh; no explicit transpose op)
        w = jax.lax.dot_general(qh, kh, (((1,), (1,)), ((), ())),
                                preferred_element_type=jnp.float32) * scale
        w = jnp.where(mask, w, -1e4)                    # old-HF causal masking
        w = w - jnp.max(w, axis=-1, keepdims=True)
        e = jnp.exp(w)
        p = e * pl.reciprocal(jnp.sum(e, axis=-1, keepdims=True), approx=True)
        head_outs.append(jnp.dot(p.astype(jnp.bfloat16), vh,
                                 preferred_element_type=jnp.float32))
    attn = jnp.concatenate(head_outs, axis=-1)          # (S, D), lane-dense

    attn = _bf16_matmul(attn, proj_w_ref, proj_b_ref[...])
    h1 = x + attn

    # ---- MLP sub-block ----
    m_in = _layer_norm(h1, ln_p[2:3], ln_p[3:4], eps)
    m = _bf16_matmul(m_in, fc_w_ref, fc_b_ref[...])     # (S, 4D)
    # GPT-2 "gelu_new" (tanh approximation), f32 math
    m = 0.5 * m * (1.0 + jnp.tanh(
        math.sqrt(2.0 / math.pi) * (m + 0.044715 * m * m * m)))
    m = _bf16_matmul(m, mproj_w_ref, mproj_b_ref[...])
    out_ref[0] = (h1 + m).astype(out_ref.dtype)


def gpt2_block(hidden, mask, blk, n_head, eps):
    """Fused transformer block: (B, S, D) -> (new_hidden, k, v), all (B, S, D)."""
    B, S, D = hidden.shape

    def full(shape):
        return pl.BlockSpec(shape, lambda b, _n=len(shape): (0,) * _n)

    row = pl.BlockSpec((1, S, D), lambda b: (b, 0, 0))
    out_sds = jax.ShapeDtypeStruct((B, S, D), jnp.float32)
    return pl.pallas_call(
        functools.partial(_gpt2_block_kernel, n_head=n_head, eps=eps),
        out_shape=(out_sds, out_sds, out_sds),
        grid=(B,),
        in_specs=[row,
                  full((S, S)),
                  full((4, D)),
                  full((D, 3 * D)), full((1, 3 * D)),
                  full((D, D)), full((1, D)),
                  full((D, 4 * D)), full((1, 4 * D)),
                  full((4 * D, D)), full((1, D))],
        out_specs=(row, row, row),
        compiler_params=pltpu.CompilerParams(
            dimension_semantics=("parallel",)),
    )(hidden, mask, blk["ln"],
      blk["c_attn_w"], blk["c_attn_b"],
      blk["c_proj_w"], blk["c_proj_b"],
      blk["mlp_fc_w"], blk["mlp_fc_b"],
      blk["mlp_proj_w"], blk["mlp_proj_b"])


def _lnf_lm_head_kernel(h_ref, ln_ref, wte_ref, o_ref, *, eps):
    x = h_ref[...]                                      # (tm, D) f32
    ln_p = ln_ref[...]                                  # (2, D): gamma, beta
    y = _layer_norm(x, ln_p[0:1], ln_p[1:2], eps)
    # logits = ln_f(h) @ wte.T (tied lm_head, no bias, no host-side transpose)
    logits = jax.lax.dot_general(
        y.astype(jnp.bfloat16), wte_ref[...].astype(jnp.bfloat16),
        (((1,), (1,)), ((), ())),
        preferred_element_type=jnp.float32)             # (tm, tv)
    o_ref[...] = logits.astype(o_ref.dtype)


def lnf_lm_head(hidden2d, ln_f, wte, eps):
    """Fused final layernorm + tied lm_head, tiled over rows and vocab."""
    M, D = hidden2d.shape
    V = wte.shape[0]
    tm = 256 if (M > 256 and M % 256 == 0) else M
    tv = 512 if (V > 512 and V % 512 == 0) else V
    return pl.pallas_call(
        functools.partial(_lnf_lm_head_kernel, eps=eps),
        out_shape=jax.ShapeDtypeStruct((M, V), jnp.float32),
        grid=(M // tm, V // tv),
        in_specs=[pl.BlockSpec((tm, D), lambda i, j: (i, 0)),
                  pl.BlockSpec((2, D), lambda i, j: (0, 0)),
                  pl.BlockSpec((tv, D), lambda i, j: (j, 0))],
        out_specs=pl.BlockSpec((tm, tv), lambda i, j: (i, j)),
        compiler_params=pltpu.CompilerParams(
            dimension_semantics=("parallel", "parallel")),
    )(hidden2d, ln_f, wte)


# ------------------------------ model (glue) ---------------------------------

def make_config():
    return dict(
        n_layer=2, n_embd=32, n_head=4, vocab_size=64,
        n_positions=16, n_ctx=16, n_cluster=8,
        layer_norm_epsilon=1e-5, initializer_range=0.02,
        output_past=True, embd_pdrop=0.1,
    )


def init_params(key, cfg):
    D = cfg["n_embd"]
    V = cfg["vocab_size"]
    std = cfg["initializer_range"]
    keys = jax.random.split(key, 3 + cfg["n_layer"])

    ones = jnp.ones((1, D), jnp.float32)
    zeros = jnp.zeros((1, D), jnp.float32)
    params = {
        "wte": jax.random.normal(keys[0], (V, D), jnp.float32) * std,
        "wpe": jax.random.normal(keys[1], (cfg["n_positions"], D), jnp.float32) * std,
        "wce": jax.random.normal(keys[2], (cfg["n_cluster"], D), jnp.float32) * std,
        # ln_f stored stacked as (gamma, beta) -> (2, D)
        "ln_f": jnp.concatenate([ones, zeros], axis=0),
        "blocks": [],
    }
    for l in range(cfg["n_layer"]):
        k0, k1, k2, k3 = jax.random.split(keys[3 + l], 4)
        blk = {
            # (ln1_g, ln1_b, ln2_g, ln2_b) stacked as (4, D)
            "ln": jnp.concatenate([ones, zeros, ones, zeros], axis=0),
            # dense weights stored bf16 (MXU operands); biases stay f32
            "c_attn_w": (jax.random.normal(k0, (D, 3 * D), jnp.float32) * std
                         ).astype(jnp.bfloat16),
            "c_attn_b": jnp.zeros((1, 3 * D), jnp.float32),
            "c_proj_w": (jax.random.normal(k1, (D, D), jnp.float32) * std
                         ).astype(jnp.bfloat16),
            "c_proj_b": jnp.zeros((1, D), jnp.float32),
            "mlp_fc_w": (jax.random.normal(k2, (D, 4 * D), jnp.float32) * std
                         ).astype(jnp.bfloat16),
            "mlp_fc_b": jnp.zeros((1, 4 * D), jnp.float32),
            "mlp_proj_w": (jax.random.normal(k3, (4 * D, D), jnp.float32) * std
                           ).astype(jnp.bfloat16),
            "mlp_proj_b": jnp.zeros((1, D), jnp.float32),
        }
        params["blocks"].append(blk)
    return params


def timer_gpt2_lmhead_forward(params, input_ids, cluster, cfg):
    """Forward of TimerGPT2LMHeadModel (past / attention_mask / head_mask /
    labels = None, inference-mode dropout).  Returns (lm_logits, presents)."""
    # TODO(synk): past / attention_mask / head_mask / labels-loss paths are not
    # exercised (the reference defaults pass None); dropout is inference-mode.
    B, S = input_ids.shape
    D = cfg["n_embd"]
    H = cfg["n_head"]
    Dh = D // H
    eps = cfg["layer_norm_epsilon"]

    position_ids = jnp.arange(S, dtype=jnp.int32)[None, :]
    inputs_embeds = jnp.take(params["wte"], input_ids, axis=0)
    position_embeds = jnp.take(params["wpe"], position_ids, axis=0)
    cluster_embeds = jnp.take(params["wce"], cluster, axis=0)
    hidden = inputs_embeds + position_embeds + cluster_embeds       # (B, S, D)

    # causal mask built once on the host (old-HF convention; 1 = keep)
    mask = jnp.tril(jnp.ones((S, S), jnp.float32))

    presents = []
    for blk in params["blocks"]:
        hidden, k, v = gpt2_block(hidden, mask, blk, H, eps)
        # HF "present" = stack((key.transpose(-2,-1), value)) -> (2, B, H, S, Dh)
        kh = k.reshape(B, S, H, Dh).transpose(0, 2, 1, 3)
        vh = v.reshape(B, S, H, Dh).transpose(0, 2, 1, 3)
        presents.append(jnp.stack([kh, vh]))

    logits = lnf_lm_head(hidden.reshape(B * S, D), params["ln_f"],
                         params["wte"], eps)
    logits = logits.reshape(B, S, cfg["vocab_size"])
    return logits, tuple(presents)


if __name__ == "__main__":
    cfg = make_config()
    key = jax.random.PRNGKey(0)
    pkey, ikey, ckey = jax.random.split(key, 3)
    params = init_params(pkey, cfg)

    B, S = 2, 8
    input_ids = jax.random.randint(ikey, (B, S), 0, cfg["vocab_size"], dtype=jnp.int32)
    cluster = jax.random.randint(ckey, (B, S), 0, cfg["n_cluster"], dtype=jnp.int32)

    fwd = jax.jit(functools.partial(timer_gpt2_lmhead_forward, cfg=cfg))
    logits, presents = fwd(params, input_ids, cluster)
    jax.block_until_ready(logits)

    assert logits.shape == (B, S, cfg["vocab_size"])
    assert logits.dtype == jnp.float32
    assert len(presents) == cfg["n_layer"]
    print("KERNEL_OK")
</pallas_src>

<mosaic_0001>
module attributes {stable_mosaic.version = 11 : i64} {
  func.func @_lnf_lm_head_kernel(%arg0: i32, %arg1: i32, %arg2: memref<16x32xf32, #tpu.memory_space<vmem>>, %arg3: memref<2x32xf32, #tpu.memory_space<vmem>>, %arg4: memref<64x32xf32, #tpu.memory_space<vmem>>, %arg5: memref<16x64xf32, #tpu.memory_space<vmem>>) attributes {dimension_semantics = [#tpu.dimension_semantics<parallel>, #tpu.dimension_semantics<parallel>], iteration_bounds = array<i64: 1, 1>, scalar_prefetch = 0 : i64, scratch_operands = 0 : i64, tpu.core_type = #tpu.core_type<tc>, window_params = [{transform_indices = @transform_0, window_bounds = array<i64: 16, 32>}, {pipeline_mode = #tpu.pipeline_mode<synchronous>, transform_indices = @transform_1, window_bounds = array<i64: 2, 32>}, {transform_indices = @transform_2, window_bounds = array<i64: 64, 32>}, {transform_indices = @transform_3, window_bounds = array<i64: 16, 64>}]} {
    %c0 = arith.constant 0 : index
    %c0_0 = arith.constant 0 : index
    %0 = vector.load %arg2[%c0, %c0_0] : memref<16x32xf32, #tpu.memory_space<vmem>>, vector<16x32xf32>
    %c0_1 = arith.constant 0 : index
    %c0_2 = arith.constant 0 : index
    %1 = vector.load %arg3[%c0_1, %c0_2] : memref<2x32xf32, #tpu.memory_space<vmem>>, vector<2x32xf32>
    %2 = vector.extract_strided_slice %1 {offsets = [0, 0], sizes = [1, 32], strides = [1, 1]} : vector<2x32xf32> to vector<1x32xf32>
    %3 = vector.extract_strided_slice %1 {offsets = [1, 0], sizes = [1, 32], strides = [1, 1]} : vector<2x32xf32> to vector<1x32xf32>
    %cst = arith.constant dense<0.000000e+00> : vector<16xf32>
    %4 = vector.multi_reduction <add>, %0, %cst [1] : vector<16x32xf32> to vector<16xf32>
    %5 = vector.shape_cast %4 : vector<16xf32> to vector<16x1xf32>
    %cst_3 = arith.constant 3.200000e+01 : f32
    %6 = vector.broadcast %cst_3 : f32 to vector<16x1xf32>
    %7 = arith.divf %5, %6 : vector<16x1xf32>
    %8 = vector.broadcast %7 : vector<16x1xf32> to vector<16x32xf32>
    %9 = arith.subf %0, %8 : vector<16x32xf32>
    %10 = arith.mulf %9, %9 : vector<16x32xf32>
    %cst_4 = arith.constant dense<0.000000e+00> : vector<16xf32>
    %11 = vector.multi_reduction <add>, %10, %cst_4 [1] : vector<16x32xf32> to vector<16xf32>
    %12 = vector.shape_cast %11 : vector<16xf32> to vector<16x1xf32>
    %cst_5 = arith.constant 3.200000e+01 : f32
    %13 = vector.broadcast %cst_5 : f32 to vector<16x1xf32>
    %14 = arith.divf %12, %13 : vector<16x1xf32>
    %cst_6 = arith.constant 9.99999974E-6 : f32
    %15 = vector.broadcast %cst_6 : f32 to vector<16x1xf32>
    %16 = arith.addf %14, %15 : vector<16x1xf32>
    %17 = math.rsqrt %16 : vector<16x1xf32>
    %18 = vector.broadcast %17 : vector<16x1xf32> to vector<16x32xf32>
    %19 = arith.mulf %9, %18 : vector<16x32xf32>
    %20 = vector.broadcast %2 : vector<1x32xf32> to vector<16x32xf32>
    %21 = arith.mulf %19, %20 : vector<16x32xf32>
    %22 = vector.broadcast %3 : vector<1x32xf32> to vector<16x32xf32>
    %23 = arith.addf %21, %22 : vector<16x32xf32>
    %24 = arith.truncf %23 : vector<16x32xf32> to vector<16x32xbf16>
    %c0_7 = arith.constant 0 : index
    %c0_8 = arith.constant 0 : index
    %25 = vector.load %arg4[%c0_7, %c0_8] : memref<64x32xf32, #tpu.memory_space<vmem>>, vector<64x32xf32>
    %26 = arith.truncf %25 : vector<64x32xf32> to vector<64x32xbf16>
    %cst_9 = arith.constant dense<0.000000e+00> : vector<16x64xf32>
    %27 = tpu.matmul %24, %26, %cst_9 {dimension_numbers = #tpu.dot_dimension_numbers<[1], [1], [0], [0], [0, 0, 1, 0], [], []>} : vector<16x32xbf16>, vector<64x32xbf16>, vector<16x64xf32> -> vector<16x64xf32>
    %c0_10 = arith.constant 0 : index
    %c0_11 = arith.constant 0 : index
    %28 = vector.load %arg5[%c0_10, %c0_11] : memref<16x64xf32, #tpu.memory_space<vmem>>, vector<16x64xf32>
    tpu.vector_store %arg5[%c0_10, %c0_11], %27 {strides = array<i32>} : memref<16x64xf32, #tpu.memory_space<vmem>>, vector<16x64xf32>,
    return
  }
  func.func @transform_0(%arg0: i32, %arg1: i32) -> (i32, i32) {
    %c0_i32 = arith.constant 0 : i32
    %c0_i32_0 = arith.constant 0 : i32
    return %arg0, %c0_i32 : i32, i32
  }
  func.func @transform_1(%arg0: i32, %arg1: i32) -> (i32, i32) {
    %c0_i32 = arith.constant 0 : i32
    %c0_i32_0 = arith.constant 0 : i32
    %c0_i32_1 = arith.constant 0 : i32
    return %c0_i32, %c0_i32_0 : i32, i32
  }
  func.func @transform_2(%arg0: i32, %arg1: i32) -> (i32, i32) {
    %c0_i32 = arith.constant 0 : i32
    %c0_i32_0 = arith.constant 0 : i32
    return %arg1, %c0_i32 : i32, i32
  }
  func.func @transform_3(%arg0: i32, %arg1: i32) -> (i32, i32) {
    %c0_i32 = arith.constant 0 : i32
    return %arg0, %arg1 : i32, i32
  }
}

module attributes {stable_mosaic.version = 11 : i64} {
  func.func @_gpt2_block_kernel(%arg0: i32, %arg1: memref<1x8x32xf32, #tpu.memory_space<vmem>>, %arg2: memref<8x8xf32, #tpu.memory_space<vmem>>, %arg3: memref<4x32xf32, #tpu.memory_space<vmem>>, %arg4: memref<32x96xbf16, #tpu.memory_space<vmem>>, %arg5: memref<1x96xf32, #tpu.memory_space<vmem>>, %arg6: memref<32x32xbf16, #tpu.memory_space<vmem>>, %arg7: memref<1x32xf32, #tpu.memory_space<vmem>>, %arg8: memref<32x128xbf16, #tpu.memory_space<vmem>>, %arg9: memref<1x128xf32, #tpu.memory_space<vmem>>, %arg10: memref<128x32xbf16, #tpu.memory_space<vmem>>, %arg11: memref<1x32xf32, #tpu.memory_space<vmem>>, %arg12: memref<1x8x32xf32, #tpu.memory_space<vmem>>, %arg13: memref<1x8x32xf32, #tpu.memory_space<vmem>>, %arg14: memref<1x8x32xf32, #tpu.memory_space<vmem>>) attributes {dimension_semantics = [#tpu.dimension_semantics<parallel>], iteration_bounds = array<i64: 2>, scalar_prefetch = 0 : i64, scratch_operands = 0 : i64, tpu.core_type = #tpu.core_type<tc>, window_params = [{transform_indices = @transform_0, window_bounds = array<i64: 1, 8, 32>}, {pipeline_mode = #tpu.pipeline_mode<synchronous>, transform_indices = @transform_1, window_bounds = array<i64: 8, 8>}, {pipeline_mode = #tpu.pipeline_mode<synchronous>, transform_indices = @transform_2, window_bounds = array<i64: 4, 32>}, {pipeline_mode = #tpu.pipeline_mode<synchronous>, transform_indices = @transform_3, window_bounds = array<i64: 32, 96>}, {pipeline_mode = #tpu.pipeline_mode<synchronous>, transform_indices = @transform_4, window_bounds = array<i64: 1, 96>}, {pipeline_mode = #tpu.pipeline_mode<synchronous>, transform_indices = @transform_5, window_bounds = array<i64: 32, 32>}, {pipeline_mode = #tpu.pipeline_mode<synchronous>, transform_indices = @transform_6, window_bounds = array<i64: 1, 32>}, {pipeline_mode = #tpu.pipeline_mode<synchronous>, transform_indices = @transform_7, window_bounds = array<i64: 32, 128>}, {pipeline_mode = #tpu.pipeline_mode<synchronous>, transform_indices = @transform_8, window_bounds = array<i64: 1, 128>}, {pipeline_mode = #tpu.pipeline_mode<synchronous>, transform_indices = @transform_9, window_bounds = array<i64: 128, 32>}, {pipeline_mode = #tpu.pipeline_mode<synchronous>, transform_indices = @transform_10, window_bounds = array<i64: 1, 32>}, {transform_indices = @transform_11, window_bounds = array<i64: 1, 8, 32>}, {transform_indices = @transform_12, window_bounds = array<i64: 1, 8, 32>}, {transform_indices = @transform_13, window_bounds = array<i64: 1, 8, 32>}]} {
    %c0 = arith.constant 0 : index
    %c0_0 = arith.constant 0 : index
    %c0_1 = arith.constant 0 : index
    %0 = vector.load %arg1[%c0, %c0_0, %c0_1] : memref<1x8x32xf32, #tpu.memory_space<vmem>>, vector<1x8x32xf32>
    %1 = vector.shape_cast %0 : vector<1x8x32xf32> to vector<8x32xf32>
    %c0_2 = arith.constant 0 : index
    %c0_3 = arith.constant 0 : index
    %2 = vector.load %arg3[%c0_2, %c0_3] : memref<4x32xf32, #tpu.memory_space<vmem>>, vector<4x32xf32>
    %c0_4 = arith.constant 0 : index
    %c0_5 = arith.constant 0 : index
    %3 = vector.load %arg2[%c0_4, %c0_5] : memref<8x8xf32, #tpu.memory_space<vmem>>, vector<8x8xf32>
    %cst = arith.constant 0.000000e+00 : f32
    %4 = vector.broadcast %cst : f32 to vector<8x8xf32>
    %5 = arith.cmpf one, %3, %4 : vector<8x8xf32>
    %6 = vector.extract_strided_slice %2 {offsets = [0, 0], sizes = [1, 32], strides = [1, 1]} : vector<4x32xf32> to vector<1x32xf32>
    %7 = vector.extract_strided_slice %2 {offsets = [1, 0], sizes = [1, 32], strides = [1, 1]} : vector<4x32xf32> to vector<1x32xf32>
    %cst_6 = arith.constant dense<0.000000e+00> : vector<8xf32>
    %8 = vector.multi_reduction <add>, %1, %cst_6 [1] : vector<8x32xf32> to vector<8xf32>
    %9 = vector.shape_cast %8 : vector<8xf32> to vector<8x1xf32>
    %cst_7 = arith.constant 3.200000e+01 : f32
    %10 = vector.broadcast %cst_7 : f32 to vector<8x1xf32>
    %11 = arith.divf %9, %10 : vector<8x1xf32>
    %12 = vector.broadcast %11 : vector<8x1xf32> to vector<8x32xf32>
    %13 = arith.subf %1, %12 : vector<8x32xf32>
    %14 = arith.mulf %13, %13 : vector<8x32xf32>
    %cst_8 = arith.constant dense<0.000000e+00> : vector<8xf32>
    %15 = vector.multi_reduction <add>, %14, %cst_8 [1] : vector<8x32xf32> to vector<8xf32>
    %16 = vector.shape_cast %15 : vector<8xf32> to vector<8x1xf32>
    %cst_9 = arith.constant 3.200000e+01 : f32
    %17 = vector.broadcast %cst_9 : f32 to vector<8x1xf32>
    %18 = arith.divf %16, %17 : vector<8x1xf32>
    %cst_10 = arith.constant 9.99999974E-6 : f32
    %19 = vector.broadcast %cst_10 : f32 to vector<8x1xf32>
    %20 = arith.addf %18, %19 : vector<8x1xf32>
    %21 = math.rsqrt %20 : vector<8x1xf32>
    %22 = vector.broadcast %21 : vector<8x1xf32> to vector<8x32xf32>
    %23 = arith.mulf %13, %22 : vector<8x32xf32>
    %24 = vector.broadcast %6 : vector<1x32xf32> to vector<8x32xf32>
    %25 = arith.mulf %23, %24 : vector<8x32xf32>
    %26 = vector.broadcast %7 : vector<1x32xf32> to vector<8x32xf32>
    %27 = arith.addf %25, %26 : vector<8x32xf32>
    %c0_11 = arith.constant 0 : index
    %c0_12 = arith.constant 0 : index
    %28 = vector.load %arg5[%c0_11, %c0_12] : memref<1x96xf32, #tpu.memory_space<vmem>>, vector<1x96xf32>
    %29 = arith.truncf %27 : vector<8x32xf32> to vector<8x32xbf16>
    %c0_13 = arith.constant 0 : index
    %c0_14 = arith.constant 0 : index
    %30 = vector.load %arg4[%c0_13, %c0_14] : memref<32x96xbf16, #tpu.memory_space<vmem>>, vector<32x96xbf16>
    %cst_15 = arith.constant dense<0.000000e+00> : vector<8x96xf32>
    %31 = tpu.matmul %29, %30, %cst_15 {dimension_numbers = #tpu.dot_dimension_numbers<[1], [0], [0], [1], [0, 0, 1, 1], [], []>} : vector<8x32xbf16>, vector<32x96xbf16>, vector<8x96xf32> -> vector<8x96xf32>
    %32 = vector.broadcast %28 : vector<1x96xf32> to vector<8x96xf32>
    %33 = arith.addf %31, %32 : vector<8x96xf32>
    %34 = vector.extract_strided_slice %33 {offsets = [0, 0], sizes = [8, 32], strides = [1, 1]} : vector<8x96xf32> to vector<8x32xf32>
    %35 = vector.extract_strided_slice %33 {offsets = [0, 32], sizes = [8, 32], strides = [1, 1]} : vector<8x96xf32> to vector<8x32xf32>
    %36 = vector.extract_strided_slice %33 {offsets = [0, 64], sizes = [8, 32], strides = [1, 1]} : vector<8x96xf32> to vector<8x32xf32>
    %c0_16 = arith.constant 0 : index
    %c0_17 = arith.constant 0 : index
    %c0_18 = arith.constant 0 : index
    %37 = vector.load %arg13[%c0_16, %c0_17, %c0_18] : memref<1x8x32xf32, #tpu.memory_space<vmem>>, vector<1x8x32xf32>
    %38 = vector.shape_cast %37 : vector<1x8x32xf32> to vector<8x32xf32>
    %39 = vector.shape_cast %35 : vector<8x32xf32> to vector<1x8x32xf32>
    tpu.vector_store %arg13[%c0_16, %c0_17, %c0_18], %39 {strides = array<i32>} : memref<1x8x32xf32, #tpu.memory_space<vmem>>, vector<1x8x32xf32>,
    %c0_19 = arith.constant 0 : index
    %c0_20 = arith.constant 0 : index
    %c0_21 = arith.constant 0 : index
    %40 = vector.load %arg14[%c0_19, %c0_20, %c0_21] : memref<1x8x32xf32, #tpu.memory_space<vmem>>, vector<1x8x32xf32>
    %41 = vector.shape_cast %40 : vector<1x8x32xf32> to vector<8x32xf32>
    %42 = vector.shape_cast %36 : vector<8x32xf32> to vector<1x8x32xf32>
    tpu.vector_store %arg14[%c0_19, %c0_20, %c0_21], %42 {strides = array<i32>} : memref<1x8x32xf32, #tpu.memory_space<vmem>>, vector<1x8x32xf32>,
    %43 = vector.extract_strided_slice %34 {offsets = [0, 0], sizes = [8, 8], strides = [1, 1]} : vector<8x32xf32> to vector<8x8xf32>
    %44 = arith.truncf %43 : vector<8x8xf32> to vector<8x8xbf16>
    %45 = vector.extract_strided_slice %35 {offsets = [0, 0], sizes = [8, 8], strides = [1, 1]} : vector<8x32xf32> to vector<8x8xf32>
    %46 = arith.truncf %45 : vector<8x8xf32> to vector<8x8xbf16>
    %47 = vector.extract_strided_slice %36 {offsets = [0, 0], sizes = [8, 8], strides = [1, 1]} : vector<8x32xf32> to vector<8x8xf32>
    %48 = arith.truncf %47 : vector<8x8xf32> to vector<8x8xbf16>
    %cst_22 = arith.constant dense<0.000000e+00> : vector<8x8xf32>
    %49 = tpu.matmul %44, %46, %cst_22 {dimension_numbers = #tpu.dot_dimension_numbers<[1], [1], [0], [0], [0, 0, 1, 0], [], []>} : vector<8x8xbf16>, vector<8x8xbf16>, vector<8x8xf32> -> vector<8x8xf32>
    %cst_23 = arith.constant 0.353553385 : f32
    %50 = vector.broadcast %cst_23 : f32 to vector<8x8xf32>
    %51 = arith.mulf %49, %50 : vector<8x8xf32>
    %cst_24 = arith.constant -1.000000e+04 : f32
    %52 = vector.broadcast %cst_24 : f32 to vector<8x8xf32>
    %53 = arith.select %5, %51, %52 : vector<8x8xi1>, vector<8x8xf32>
    %cst_25 = arith.constant dense<0xFF800000> : vector<8xf32>
    %54 = vector.multi_reduction <maximumf>, %53, %cst_25 [1] : vector<8x8xf32> to vector<8xf32>
    %55 = vector.shape_cast %54 : vector<8xf32> to vector<8x1xf32>
    %56 = vector.broadcast %55 : vector<8x1xf32> to vector<8x8xf32>
    %57 = arith.subf %53, %56 : vector<8x8xf32>
    %58 = math.exp %57 : vector<8x8xf32>
    %cst_26 = arith.constant dense<0.000000e+00> : vector<8xf32>
    %59 = vector.multi_reduction <add>, %58, %cst_26 [1] : vector<8x8xf32> to vector<8xf32>
    %60 = vector.shape_cast %59 : vector<8xf32> to vector<8x1xf32>
    %61 = tpu.reciprocal %60 {approx = true} : vector<8x1xf32> -> vector<8x1xf32>
    %62 = vector.broadcast %61 : vector<8x1xf32> to vector<8x8xf32>
    %63 = arith.mulf %58, %62 : vector<8x8xf32>
    %64 = arith.truncf %63 : vector<8x8xf32> to vector<8x8xbf16>
    %cst_27 = arith.constant dense<0.000000e+00> : vector<8x8xf32>
    %65 = tpu.matmul %64, %48, %cst_27 {dimension_numbers = #tpu.dot_dimension_numbers<[1], [0], [0], [1], [0, 0, 1, 1], [], []>} : vector<8x8xbf16>, vector<8x8xbf16>, vector<8x8xf32> -> vector<8x8xf32>
    %66 = vector.extract_strided_slice %34 {offsets = [0, 8], sizes = [8, 8], strides = [1, 1]} : vector<8x32xf32> to vector<8x8xf32>
    %67 = arith.truncf %66 : vector<8x8xf32> to vector<8x8xbf16>
    %68 = vector.extract_strided_slice %35 {offsets = [0, 8], sizes = [8, 8], strides = [1, 1]} : vector<8x32xf32> to vector<8x8xf32>
    %69 = arith.truncf %68 : vector<8x8xf32> to vector<8x8xbf16>
    %70 = vector.extract_strided_slice %36 {offsets = [0, 8], sizes = [8, 8], strides = [1, 1]} : vector<8x32xf32> to vector<8x8xf32>
    %71 = arith.truncf %70 : vector<8x8xf32> to vector<8x8xbf16>
    %cst_28 = arith.constant dense<0.000000e+00> : vector<8x8xf32>
    %72 = tpu.matmul %67, %69, %cst_28 {dimension_numbers = #tpu.dot_dimension_numbers<[1], [1], [0], [0], [0, 0, 1, 0], [], []>} : vector<8x8xbf16>, vector<8x8xbf16>, vector<8x8xf32> -> vector<8x8xf32>
    %cst_29 = arith.constant 0.353553385 : f32
    %73 = vector.broadcast %cst_29 : f32 to vector<8x8xf32>
    %74 = arith.mulf %72, %73 : vector<8x8xf32>
    %cst_30 = arith.constant -1.000000e+04 : f32
    %75 = vector.broadcast %cst_30 : f32 to vector<8x8xf32>
    %76 = arith.select %5, %74, %75 : vector<8x8xi1>, vector<8x8xf32>
    %cst_31 = arith.constant dense<0xFF800000> : vector<8xf32>
    %77 = vector.multi_reduction <maximumf>, %76, %cst_31 [1] : vector<8x8xf32> to vector<8xf32>
    %78 = vector.shape_cast %77 : vector<8xf32> to vector<8x1xf32>
    %79 = vector.broadcast %78 : vector<8x1xf32> to vector<8x8xf32>
    %80 = arith.subf %76, %79 : vector<8x8xf32>
    %81 = math.exp %80 : vector<8x8xf32>
    %cst_32 = arith.constant dense<0.000000e+00> : vector<8xf32>
    %82 = vector.multi_reduction <add>, %81, %cst_32 [1] : vector<8x8xf32> to vector<8xf32>
    %83 = vector.shape_cast %82 : vector<8xf32> to vector<8x1xf32>
    %84 = tpu.reciprocal %83 {approx = true} : vector<8x1xf32> -> vector<8x1xf32>
    %85 = vector.broadcast %84 : vector<8x1xf32> to vector<8x8xf32>
    %86 = arith.mulf %81, %85 : vector<8x8xf32>
    %87 = arith.truncf %86 : vector<8x8xf32> to vector<8x8xbf16>
    %cst_33 = arith.constant dense<0.000000e+00> : vector<8x8xf32>
    %88 = tpu.matmul %87, %71, %cst_33 {dimension_numbers = #tpu.dot_dimension_numbers<[1], [0], [0], [1], [0, 0, 1, 1], [], []>} : vector<8x8xbf16>, vector<8x8xbf16>, vector<8x8xf32> -> vector<8x8xf32>
    %89 = vector.extract_strided_slice %34 {offsets = [0, 16], sizes = [8, 8], strides = [1, 1]} : vector<8x32xf32> to vector<8x8xf32>
    %90 = arith.truncf %89 : vector<8x8xf32> to vector<8x8xbf16>
    %91 = vector.extract_strided_slice %35 {offsets = [0, 16], sizes = [8, 8], strides = [1, 1]} : vector<8x32xf32> to vector<8x8xf32>
    %92 = arith.truncf %91 : vector<8x8xf32> to vector<8x8xbf16>
    %93 = vector.extract_strided_slice %36 {offsets = [0, 16], sizes = [8, 8], strides = [1, 1]} : vector<8x32xf32> to vector<8x8xf32>
    %94 = arith.truncf %93 : vector<8x8xf32> to vector<8x8xbf16>
    %cst_34 = arith.constant dense<0.000000e+00> : vector<8x8xf32>
    %95 = tpu.matmul %90, %92, %cst_34 {dimension_numbers = #tpu.dot_dimension_numbers<[1], [1], [0], [0], [0, 0, 1, 0], [], []>} : vector<8x8xbf16>, vector<8x8xbf16>, vector<8x8xf32> -> vector<8x8xf32>
    %cst_35 = arith.constant 0.353553385 : f32
    %96 = vector.broadcast %cst_35 : f32 to vector<8x8xf32>
    %97 = arith.mulf %95, %96 : vector<8x8xf32>
    %cst_36 = arith.constant -1.000000e+04 : f32
    %98 = vector.broadcast %cst_36 : f32 to vector<8x8xf32>
    %99 = arith.select %5, %97, %98 : vector<8x8xi1>, vector<8x8xf32>
    %cst_37 = arith.constant dense<0xFF800000> : vector<8xf32>
    %100 = vector.multi_reduction <maximumf>, %99, %cst_37 [1] : vector<8x8xf32> to vector<8xf32>
    %101 = vector.shape_cast %100 : vector<8xf32> to vector<8x1xf32>
    %102 = vector.broadcast %101 : vector<8x1xf32> to vector<8x8xf32>
    %103 = arith.subf %99, %102 : vector<8x8xf32>
    %104 = math.exp %103 : vector<8x8xf32>
    %cst_38 = arith.constant dense<0.000000e+00> : vector<8xf32>
    %105 = vector.multi_reduction <add>, %104, %cst_38 [1] : vector<8x8xf32> to vector<8xf32>
    %106 = vector.shape_cast %105 : vector<8xf32> to vector<8x1xf32>
    %107 = tpu.reciprocal %106 {approx = true} : vector<8x1xf32> -> vector<8x1xf32>
    %108 = vector.broadcast %107 : vector<8x1xf32> to vector<8x8xf32>
    %109 = arith.mulf %104, %108 : vector<8x8xf32>
    %110 = arith.truncf %109 : vector<8x8xf32> to vector<8x8xbf16>
    %cst_39 = arith.constant dense<0.000000e+00> : vector<8x8xf32>
    %111 = tpu.matmul %110, %94, %cst_39 {dimension_numbers = #tpu.dot_dimension_numbers<[1], [0], [0], [1], [0, 0, 1, 1], [], []>} : vector<8x8xbf16>, vector<8x8xbf16>, vector<8x8xf32> -> vector<8x8xf32>
    %112 = vector.extract_strided_slice %34 {offsets = [0, 24], sizes = [8, 8], strides = [1, 1]} : vector<8x32xf32> to vector<8x8xf32>
    %113 = arith.truncf %112 : vector<8x8xf32> to vector<8x8xbf16>
    %114 = vector.extract_strided_slice %35 {offsets = [0, 24], sizes = [8, 8], strides = [1, 1]} : vector<8x32xf32> to vector<8x8xf32>
    %115 = arith.truncf %114 : vector<8x8xf32> to vector<8x8xbf16>
    %116 = vector.extract_strided_slice %36 {offsets = [0, 24], sizes = [8, 8], strides = [1, 1]} : vector<8x32xf32> to vector<8x8xf32>
    %117 = arith.truncf %116 : vector<8x8xf32> to vector<8x8xbf16>
    %cst_40 = arith.constant dense<0.000000e+00> : vector<8x8xf32>
    %118 = tpu.matmul %113, %115, %cst_40 {dimension_numbers = #tpu.dot_dimension_numbers<[1], [1], [0], [0], [0, 0, 1, 0], [], []>} : vector<8x8xbf16>, vector<8x8xbf16>, vector<8x8xf32> -> vector<8x8xf32>
    %cst_41 = arith.constant 0.353553385 : f32
    %119 = vector.broadcast %cst_41 : f32 to vector<8x8xf32>
    %120 = arith.mulf %118, %119 : vector<8x8xf32>
    %cst_42 = arith.constant -1.000000e+04 : f32
    %121 = vector.broadcast %cst_42 : f32 to vector<8x8xf32>
    %122 = arith.select %5, %120, %121 : vector<8x8xi1>, vector<8x8xf32>
    %cst_43 = arith.constant dense<0xFF800000> : vector<8xf32>
    %123 = vector.multi_reduction <maximumf>, %122, %cst_43 [1] : vector<8x8xf32> to vector<8xf32>
    %124 = vector.shape_cast %123 : vector<8xf32> to vector<8x1xf32>
    %125 = vector.broadcast %124 : vector<8x1xf32> to vector<8x8xf32>
    %126 = arith.subf %122, %125 : vector<8x8xf32>
    %127 = math.exp %126 : vector<8x8xf32>
    %cst_44 = arith.constant dense<0.000000e+00> : vector<8xf32>
    %128 = vector.multi_reduction <add>, %127, %cst_44 [1] : vector<8x8xf32> to vector<8xf32>
    %129 = vector.shape_cast %128 : vector<8xf32> to vector<8x1xf32>
    %130 = tpu.reciprocal %129 {approx = true} : vector<8x1xf32> -> vector<8x1xf32>
    %131 = vector.broadcast %130 : vector<8x1xf32> to vector<8x8xf32>
    %132 = arith.mulf %127, %131 : vector<8x8xf32>
    %133 = arith.truncf %132 : vector<8x8xf32> to vector<8x8xbf16>
    %cst_45 = arith.constant dense<0.000000e+00> : vector<8x8xf32>
    %134 = tpu.matmul %133, %117, %cst_45 {dimension_numbers = #tpu.dot_dimension_numbers<[1], [0], [0], [1], [0, 0, 1, 1], [], []>} : vector<8x8xbf16>, vector<8x8xbf16>, vector<8x8xf32> -> vector<8x8xf32>
    %135 = tpu.concatenate %65, %88, %111, %134 in 1 : vector<8x8xf32>, vector<8x8xf32>, vector<8x8xf32>, vector<8x8xf32> -> vector<8x32xf32>
    %c0_46 = arith.constant 0 : index
    %c0_47 = arith.constant 0 : index
    %136 = vector.load %arg7[%c0_46, %c0_47] : memref<1x32xf32, #tpu.memory_space<vmem>>, vector<1x32xf32>
    %137 = arith.truncf %135 : vector<8x32xf32> to vector<8x32xbf16>
    %c0_48 = arith.constant 0 : index
    %c0_49 = arith.constant 0 : index
    %138 = vector.load %arg6[%c0_48, %c0_49] : memref<32x32xbf16, #tpu.memory_space<vmem>>, vector<32x32xbf16>
    %cst_50 = arith.constant dense<0.000000e+00> : vector<8x32xf32>
    %139 = tpu.matmul %137, %138, %cst_50 {dimension_numbers = #tpu.dot_dimension_numbers<[1], [0], [0], [1], [0, 0, 1, 1], [], []>} : vector<8x32xbf16>, vector<32x32xbf16>, vector<8x32xf32> -> vector<8x32xf32>
    %140 = vector.broadcast %136 : vector<1x32xf32> to vector<8x32xf32>
    %141 = arith.addf %139, %140 : vector<8x32xf32>
    %142 = arith.addf %1, %141 : vector<8x32xf32>
    %143 = vector.extract_strided_slice %2 {offsets = [2, 0], sizes = [1, 32], strides = [1, 1]} : vector<4x32xf32> to vector<1x32xf32>
    %144 = vector.extract_strided_slice %2 {offsets = [3, 0], sizes = [1, 32], strides = [1, 1]} : vector<4x32xf32> to vector<1x32xf32>
    %cst_51 = arith.constant dense<0.000000e+00> : vector<8xf32>
    %145 = vector.multi_reduction <add>, %142, %cst_51 [1] : vector<8x32xf32> to vector<8xf32>
    %146 = vector.shape_cast %145 : vector<8xf32> to vector<8x1xf32>
    %cst_52 = arith.constant 3.200000e+01 : f32
    %147 = vector.broadcast %cst_52 : f32 to vector<8x1xf32>
    %148 = arith.divf %146, %147 : vector<8x1xf32>
    %149 = vector.broadcast %148 : vector<8x1xf32> to vector<8x32xf32>
    %150 = arith.subf %142, %149 : vector<8x32xf32>
    %151 = arith.mulf %150, %150 : vector<8x32xf32>
    %cst_53 = arith.constant dense<0.000000e+00> : vector<8xf32>
    %152 = vector.multi_reduction <add>, %151, %cst_53 [1] : vector<8x32xf32> to vector<8xf32>
    %153 = vector.shape_cast %152 : vector<8xf32> to vector<8x1xf32>
    %cst_54 = arith.constant 3.200000e+01 : f32
    %154 = vector.broadcast %cst_54 : f32 to vector<8x1xf32>
    %155 = arith.divf %153, %154 : vector<8x1xf32>
    %cst_55 = arith.constant 9.99999974E-6 : f32
    %156 = vector.broadcast %cst_55 : f32 to vector<8x1xf32>
    %157 = arith.addf %155, %156 : vector<8x1xf32>
    %158 = math.rsqrt %157 : vector<8x1xf32>
    %159 = vector.broadcast %158 : vector<8x1xf32> to vector<8x32xf32>
    %160 = arith.mulf %150, %159 : vector<8x32xf32>
    %161 = vector.broadcast %143 : vector<1x32xf32> to vector<8x32xf32>
    %162 = arith.mulf %160, %161 : vector<8x32xf32>
    %163 = vector.broadcast %144 : vector<1x32xf32> to vector<8x32xf32>
    %164 = arith.addf %162, %163 : vector<8x32xf32>
    %c0_56 = arith.constant 0 : index
    %c0_57 = arith.constant 0 : index
    %165 = vector.load %arg9[%c0_56, %c0_57] : memref<1x128xf32, #tpu.memory_space<vmem>>, vector<1x128xf32>
    %166 = arith.truncf %164 : vector<8x32xf32> to vector<8x32xbf16>
    %c0_58 = arith.constant 0 : index
    %c0_59 = arith.constant 0 : index
    %167 = vector.load %arg8[%c0_58, %c0_59] : memref<32x128xbf16, #tpu.memory_space<vmem>>, vector<32x128xbf16>
    %cst_60 = arith.constant dense<0.000000e+00> : vector<8x128xf32>
    %168 = tpu.matmul %166, %167, %cst_60 {dimension_numbers = #tpu.dot_dimension_numbers<[1], [0], [0], [1], [0, 0, 1, 1], [], []>} : vector<8x32xbf16>, vector<32x128xbf16>, vector<8x128xf32> -> vector<8x128xf32>
    %169 = vector.broadcast %165 : vector<1x128xf32> to vector<8x128xf32>
    %170 = arith.addf %168, %169 : vector<8x128xf32>
    %cst_61 = arith.constant 5.000000e-01 : f32
    %171 = vector.broadcast %cst_61 : f32 to vector<8x128xf32>
    %172 = arith.mulf %171, %170 : vector<8x128xf32>
    %cst_62 = arith.constant 4.471500e-02 : f32
    %173 = vector.broadcast %cst_62 : f32 to vector<8x128xf32>
    %174 = arith.mulf %173, %170 : vector<8x128xf32>
    %175 = arith.mulf %174, %170 : vector<8x128xf32>
    %176 = arith.mulf %175, %170 : vector<8x128xf32>
    %177 = arith.addf %170, %176 : vector<8x128xf32>
    %cst_63 = arith.constant 0.797884583 : f32
    %178 = vector.broadcast %cst_63 : f32 to vector<8x128xf32>
    %179 = arith.mulf %178, %177 : vector<8x128xf32>
    %180 = math.tanh %179 : vector<8x128xf32>
    %cst_64 = arith.constant 1.000000e+00 : f32
    %181 = vector.broadcast %cst_64 : f32 to vector<8x128xf32>
    %182 = arith.addf %181, %180 : vector<8x128xf32>
    %183 = arith.mulf %172, %182 : vector<8x128xf32>
    %c0_65 = arith.constant 0 : index
    %c0_66 = arith.constant 0 : index
    %184 = vector.load %arg11[%c0_65, %c0_66] : memref<1x32xf32, #tpu.memory_space<vmem>>, vector<1x32xf32>
    %185 = arith.truncf %183 : vector<8x128xf32> to vector<8x128xbf16>
    %c0_67 = arith.constant 0 : index
    %c0_68 = arith.constant 0 : index
    %186 = vector.load %arg10[%c0_67, %c0_68] : memref<128x32xbf16, #tpu.memory_space<vmem>>, vector<128x32xbf16>
    %cst_69 = arith.constant dense<0.000000e+00> : vector<8x32xf32>
    %187 = tpu.matmul %185, %186, %cst_69 {dimension_numbers = #tpu.dot_dimension_numbers<[1], [0], [0], [1], [0, 0, 1, 1], [], []>} : vector<8x128xbf16>, vector<128x32xbf16>, vector<8x32xf32> -> vector<8x32xf32>
    %188 = vector.broadcast %184 : vector<1x32xf32> to vector<8x32xf32>
    %189 = arith.addf %187, %188 : vector<8x32xf32>
    %190 = arith.addf %142, %189 : vector<8x32xf32>
    %c0_70 = arith.constant 0 : index
    %c0_71 = arith.constant 0 : index
    %c0_72 = arith.constant 0 : index
    %191 = vector.load %arg12[%c0_70, %c0_71, %c0_72] : memref<1x8x32xf32, #tpu.memory_space<vmem>>, vector<1x8x32xf32>
    %192 = vector.shape_cast %191 : vector<1x8x32xf32> to vector<8x32xf32>
    %193 = vector.shape_cast %190 : vector<8x32xf32> to vector<1x8x32xf32>
    tpu.vector_store %arg12[%c0_70, %c0_71, %c0_72], %193 {strides = array<i32>} : memref<1x8x32xf32, #tpu.memory_space<vmem>>, vector<1x8x32xf32>,
    return
  }
  func.func @transform_0(%arg0: i32) -> (i32, i32, i32) {
    %c0_i32 = arith.constant 0 : i32
    %c0_i32_0 = arith.constant 0 : i32
    %c0_i32_1 = arith.constant 0 : i32
    return %arg0, %c0_i32, %c0_i32_0 : i32, i32, i32
  }
  func.func @transform_1(%arg0: i32) -> (i32, i32) {
    %c0_i32 = arith.constant 0 : i32
    %c0_i32_0 = arith.constant 0 : i32
    %c0_i32_1 = arith.constant 0 : i32
    return %c0_i32, %c0_i32_0 : i32, i32
  }
  func.func @transform_2(%arg0: i32) -> (i32, i32) {
    %c0_i32 = arith.constant 0 : i32
    %c0_i32_0 = arith.constant 0 : i32
    %c0_i32_1 = arith.constant 0 : i32
    return %c0_i32, %c0_i32_0 : i32, i32
  }
  func.func @transform_3(%arg0: i32) -> (i32, i32) {
    %c0_i32 = arith.constant 0 : i32
    %c0_i32_0 = arith.constant 0 : i32
    %c0_i32_1 = arith.constant 0 : i32
    return %c0_i32, %c0_i32_0 : i32, i32
  }
  func.func @transform_4(%arg0: i32) -> (i32, i32) {
    %c0_i32 = arith.constant 0 : i32
    %c0_i32_0 = arith.constant 0 : i32
    %c0_i32_1 = arith.constant 0 : i32
    return %c0_i32, %c0_i32_0 : i32, i32
  }
  func.func @transform_5(%arg0: i32) -> (i32, i32) {
    %c0_i32 = arith.constant 0 : i32
    %c0_i32_0 = arith.constant 0 : i32
    %c0_i32_1 = arith.constant 0 : i32
    return %c0_i32, %c0_i32_0 : i32, i32
  }
  func.func @transform_6(%arg0: i32) -> (i32, i32) {
    %c0_i32 = arith.constant 0 : i32
    %c0_i32_0 = arith.constant 0 : i32
    %c0_i32_1 = arith.constant 0 : i32
    return %c0_i32, %c0_i32_0 : i32, i32
  }
  func.func @transform_7(%arg0: i32) -> (i32, i32) {
    %c0_i32 = arith.constant 0 : i32
    %c0_i32_0 = arith.constant 0 : i32
    %c0_i32_1 = arith.constant 0 : i32
    return %c0_i32, %c0_i32_0 : i32, i32
  }
  func.func @transform_8(%arg0: i32) -> (i32, i32) {
    %c0_i32 = arith.constant 0 : i32
    %c0_i32_0 = arith.constant 0 : i32
    %c0_i32_1 = arith.constant 0 : i32
    return %c0_i32, %c0_i32_0 : i32, i32
  }
  func.func @transform_9(%arg0: i32) -> (i32, i32) {
    %c0_i32 = arith.constant 0 : i32
    %c0_i32_0 = arith.constant 0 : i32
    %c0_i32_1 = arith.constant 0 : i32
    return %c0_i32, %c0_i32_0 : i32, i32
  }
  func.func @transform_10(%arg0: i32) -> (i32, i32) {
    %c0_i32 = arith.constant 0 : i32
    %c0_i32_0 = arith.constant 0 : i32
    %c0_i32_1 = arith.constant 0 : i32
    return %c0_i32, %c0_i32_0 : i32, i32
  }
  func.func @transform_11(%arg0: i32) -> (i32, i32, i32) {
    %c0_i32 = arith.constant 0 : i32
    %c0_i32_0 = arith.constant 0 : i32
    %c0_i32_1 = arith.constant 0 : i32
    return %arg0, %c0_i32, %c0_i32_0 : i32, i32, i32
  }
  func.func @transform_12(%arg0: i32) -> (i32, i32, i32) {
    %c0_i32 = arith.constant 0 : i32
    %c0_i32_0 = arith.constant 0 : i32
    %c0_i32_1 = arith.constant 0 : i32
    return %arg0, %c0_i32, %c0_i32_0 : i32, i32, i32
  }
  func.func @transform_13(%arg0: i32) -> (i32, i32, i32) {
    %c0_i32 = arith.constant 0 : i32
    %c0_i32_0 = arith.constant 0 : i32
    %c0_i32_1 = arith.constant 0 : i32
    return %arg0, %c0_i32, %c0_i32_0 : i32, i32, i32
  }
}

</mosaic_0001>

<bundles_post_ra>
// kernel: timer_gpt2_lmhead_forward.5
= control target key start
LH: loop header
LB: loop body
LE: loop exit
PB: predicated region body
PF: predicated region fallthrough
CT: control target
= control target key end

     0   :  { %vm19_vm0 = vcmask 261120   ;;  %s277_s0 = inlined_call_operand.vmem [shape: f32[16,32], index: 0, kind: input, shape index: {}]   ;;  %s278_s1 = inlined_call_operand.vmem [shape: f32[2,32], index: 1, kind: input, shape index: {}]   ;;  %s279_s2 = inlined_call_operand.vmem [shape: f32[64,32], index: 2, kind: input, shape index: {}]   ;;  %s280_s3 = inlined_call_operand.hbm [shape: f32[16,64], index: 3, kind: output, shape index: {}]  }
   0x1   :  { %v16_v0 = vld [vmem:[%s277_s0] sm:$0xff]  ;;  %v17_v1 = vld [vmem:[%s277_s0 + $0x8] sm:$0xff] }
   0x2   :  { %8 = vsyncpa [#allocation3], 0  ;;  %v20_v2 = vsel %vm19_vm0, %v16_v0, 0.0  ;;  %v23_v3 = vsel %vm19_vm0, %v17_v1, 0.0  ;;  %v60_v4 = vld [vmem:[%s279_s2] sm:$0xff]  ;;  %v61_v5 = vld [vmem:[%s279_s2 + $0x8] sm:$0xff]  ;;  %v47_v35 = vlaneseq }
   0x3   :  { %21 = vadd.xlane.f32.xlu0 %v20_v2  ;;  %v198_v6 = vmov 0.0   ;;  %v68_v7 = vpack.c.bf16 %v61_v5, %v60_v4  ;;  %v62_v19 = vld [vmem:[%s279_s2 + $0x10] sm:$0xff]  ;;  %v63_v20 = vld [vmem:[%s279_s2 + $0x18] sm:$0xff]  ;;  %v64_v23 = vld [vmem:[%s279_s2 + $0x20] sm:$0xff]  ;;  %vm199_vm1 = vmmov 0   ;;  %vm128_vm2 = vcmask 523264  }
   0x4   :  { %153 = vmatprep.subr.bf16.mxu0 %v198_v6  ;;  %v69_v21 = vpack.c.bf16 %v63_v20, %v62_v19  ;;  %v65_v24 = vld [vmem:[%s279_s2 + $0x28] sm:$0xff]  ;;  %v66_v27 = vld [vmem:[%s279_s2 + $0x30] sm:$0xff]  ;;  %v67_v28 = vld [vmem:[%s279_s2 + $0x38] sm:$0xff]  ;;  %161 = vmatprep.mubr.msk.bf16.mxu0 %vm199_vm1, %v198_v6  ;;  %v48_v38 = vshrl.u32 %v47_v35, 7  ;;  %s200_s2 = smov [#allocation2]  }
   0x5   :  { %v76_v8 = vsel %vm19_vm0, %v68_v7, 0  ;;  %v70_v25 = vpack.c.bf16 %v65_v24, %v64_v23  ;;  %v71_v29 = vpack.c.bf16 %v67_v28, %v66_v27  ;;  %v18_v40 = vld [vmem:[%s278_s1] sm:$0x3]  ;;  %s136_s6 = sshll.u32 %s200_s2, 4  ;;  %s137_s6 = int_to_ptr.vmem [resolvable:$true] %s136_s6 }
   0x6   :  { %154 = vmatpush3.bf16.xpose.msra.mxu0 %v76_v8  ;;  %v79_v22 = vsel %vm19_vm0, %v69_v21, 0  ;;  %v49_v39 = vsub.s32 0, %v48_v38  ;;  %v55_v44 = vsub.s32 1, %v48_v38  ;;  %s174_s1 = scalar_lea.vmem %s137_s6, 256  ;;  %p179_p1 = scmp.lt.s32.totalorder %s137_s6, %s137_s6 }
   0x7   :  { %24 = vadd.xlane.f32.xlu0 %v23_v3  ;;  %155 = vmatprep.subr.bf16.mxu0 %v198_v6  ;;  %v82_v26 = vsel %vm19_vm0, %v70_v25, 0  ;;  %v85_v30 = vsel %vm19_vm0, %v71_v29, 0  ;;  %p175_p0 = scmp.ne.s32.totalorder %s137_s6, %s174_s1  ;;  %p180_p2 = scmp.lt.s32.totalorder %s174_s1, %s174_s1 }
   0x8   :  { %v50_v43 = vrot.slane %v18_v40, %v49_v39  ;;  %v56_v48 = vrot.slane %v18_v40, %v55_v44 }
   0x9   :  { %p181_p3 = por %p180_p2, %p179_p1 }
   0xb   :  { %p182_p4 = pnand %p181_p3, %p175_p0 }
   0xe   :  { %156 = vmatpush3.bf16.xpose.msra.mxu0 %v79_v22 }
   0xf   :  { %157 = vmatprep.subr.bf16.mxu0 %v198_v6 }
  0x16   :  { %158 = vmatpush3.bf16.xpose.msra.mxu0 %v82_v26 }
  0x17   :  { %159 = vmatprep.subr.bf16.mxu0 %v198_v6 }
  0x1e   :  { %160 = vmatpush3.bf16.xpose.msra.mxu0 %v85_v30 }
  0x90   :  { %v22_v9 = vpop.xlane.xlu0 %21 }
  0x91   :  { %v27_v10 = vmul.f32 0.03125, %v22_v9 }
  0x93   :  { %v29_v11 = vsub.f32 %v16_v0, %v27_v10 }
  0x94   :  { %v25_v12 = vpop.xlane.xlu0 %24 }
  0x95   :  { %v28_v13 = vmul.f32 0.03125, %v25_v12  ;;  %v31_v14 = vmul.f32 %v29_v11, %v29_v11 }
  0x97   :  { %v30_v15 = vsub.f32 %v17_v1, %v28_v13  ;;  %v33_v16 = vsel %vm19_vm0, %v31_v14, 0.0 }
  0x98   :  { %34 = vadd.xlane.f32.xlu1 %v33_v16 }
  0x99   :  { %v32_v17 = vmul.f32 %v30_v15, %v30_v15 }
  0x9b   :  { %v36_v18 = vsel %vm19_vm0, %v32_v17, 0.0 }
  0x9c   :  { %37 = vadd.xlane.f32.xlu1 %v36_v18 }
 0x125   :  { %v35_v31 = vpop.xlane.xlu1 %34 }
 0x126   :  { %v39_v32 = vmul.f32 0.03125, %v35_v31 }
 0x128   :  { %v41_v33 = vadd.f32 1e-05, %v39_v32 }
 0x129   :  { %v38_v34 = vpop.xlane.xlu1 %37 }
 0x12a   :  { %170 = vrsqrt.f32 %v41_v33  ;;  %v40_v36 = vmul.f32 0.03125, %v38_v34 }
 0x12c   :  { %v42_v37 = vadd.f32 1e-05, %v40_v36 }
 0x12e   :  { %172 = vrsqrt.f32 %v42_v37 }
 0x134   :  { %v171_v41 = vpop.eup %170 }
 0x135   :  { %v45_v42 = vmul.f32 %v171_v41, %v29_v11 }
 0x137   :  { %v51_v47 = vmul.f32 %v50_v43, %v45_v42 }
 0x138   :  { %v173_v45 = vpop.eup %172 }
 0x139   :  { %v46_v46 = vmul.f32 %v173_v45, %v30_v15  ;;  %v57_v50 = vadd.f32 %v56_v48, %v51_v47 }
 0x13b   :  { %v52_v49 = vmul.f32 %v50_v43, %v46_v46 }
 0x13d   :  { %v58_v51 = vadd.f32 %v56_v48, %v52_v49 }
 0x13f   :  { %v59_v52 = vpack.c.bf16 %v58_v51, %v57_v50 }
 0x141   :  { %162 = vmatmul.mubr.msk.bf16.vlgmr.msra.gmra.mrb[0].mxu0 %vm19_vm0, %v59_v52 }
 0x214   :  { %v121_v53 = vpop.f32.mrb[0].mxu0 }
 0x215   :  { %129 = vst.msk [vmem:[#allocation2] sm:$0xff] %vm128_vm2, %v121_v53  ;;  %v163_v54 = vpop.f32.mrb[1].mxu0 }
 0x216   :  { %v124_v55 = vpop.f32.mrb[2].mxu0 }
 0x217   :  { %130 = vst.msk [vmem:[#allocation2 + $0x8] sm:$0xff] %vm128_vm2, %v124_v55  ;;  %v164_v56 = vpop.f32.mrb[3].mxu0 }
 0x218   :  { %185 = shalt.err (!%p182_p4)
}
 0x219   :  { %s186_s9 = scalar_lea.hbm %s280_s3, 256 }
 0x21a   :  { %p187_p5 = scmp.ne.s32.totalorder %s280_s3, %s186_s9  ;;  %p190_p6 = scmp.lt.u32.totalorder %s186_s9, %s280_s3 }
 0x21c   :  { %p192_p7 = pnand %p190_p6, %p187_p5 }
 0x21e   :  { %195 = shalt.err (!%p192_p7)
}
 0x21f   :  { %s201_s14 = smov 128   ;;  %s202_s15 = smov 8  }
 0x220   :  { %142 = dma.vmem_to_hbm [thread:$0]  %s137_s6, 256, %s280_s3, [#allocation3], %s201_s14, %s201_s14, %s202_s15  }
 0x221   :  { %196 = dma.done.wait [#allocation3], 256  }
 0x222   :  { %197 = vsyncadd [#allocation3], 4294967040 }
 0x223   :  { %146 = vsyncpa [#allocation3], 1 }

// kernel: timer_gpt2_lmhead_forward.3
= control target key start
LH: loop header
LB: loop body
LE: loop exit
PB: predicated region body
PF: predicated region fallthrough
CT: control target
= control target key end

     0   :  { %s1746_s25 = smov 0   ;;  %s1966_s0 = inlined_call_operand.vmem [shape: f32[2,8,32], index: 0, kind: input, shape index: {}]   ;;  %s1967_s1 = inlined_call_operand.vmem [shape: f32[8,8], index: 1, kind: input, shape index: {}]   ;;  %s1968_s2 = inlined_call_operand.vmem [shape: f32[4,32], index: 2, kind: input, shape index: {}]   ;;  %s1969_s3 = inlined_call_operand.vmem [shape: bf16[32,96], index: 3, kind: input, shape index: {}]   ;;  %s1970_s4 = inlined_call_operand.vmem [shape: f32[1,96], index: 4, kind: input, shape index: {}]   ;;  %s1971_s5 = inlined_call_operand.vmem [shape: bf16[32,32], index: 5, kind: input, shape index: {}]   ;;  %s1972_s6 = inlined_call_operand.vmem [shape: f32[1,32], index: 6, kind: input, shape index: {}]   ;;  %s1973_s7 = inlined_call_operand.vmem [shape: bf16[32,128], index: 7, kind: input, shape index: {}]   ;;  %s1974_s8 = inlined_call_operand.vmem [shape: f32[1,128], index: 8, kind: input, shape index: {}]   ;;  %s1975_s9 = inlined_call_operand.vmem [shape: bf16[128,32], index: 9, kind: input, shape index: {}]   ;;  %s1976_s10 = inlined_call_operand.vmem [shape: f32[1,32], index: 10, kind: input, shape index: {}]   ;;  %s1977_s11 = inlined_call_operand.vmem [shape: f32[2,8,32], index: 11, kind: output, shape index: {0}]   ;;  %s1978_s12 = inlined_call_operand.vmem [shape: f32[2,8,32], index: 12, kind: output, shape index: {1}]   ;;  %s1979_s13 = inlined_call_operand.vmem [shape: f32[2,8,32], index: 13, kind: output, shape index: {2}]  }
   0x1 LB: > { %s1426_s26 = sadd.s32 4294967295, %s1658_s25   ;;  %p1430_p0 = scmp.ge.s32.totalorder %s1658_s25, 1  ;;  %s1658_s25 = sphi %s1746_s25, %s24_s25  }
   0x2   : > { %p391_p1 = scmp.lt.s32.totalorder %s1658_s25, 3 }
   0x4   : > { %p392_p2 = pnand %p1430_p0, %p391_p1 }
   0x5   : > { %p441_p3 = scmp.lt.s32.totalorder (!%p392_p2), %s1426_s26, 1  ;;  %vm462_vm0 = vcmask (!%p392_p2), 261120   ;;  %v1616_v7 = vld [vmem:[%s1969_s3] sm:$0xff] (!%p392_p2)   ;;  %v1660_v8 = vmov (!%p392_p2), 0.0   ;;  %vm1661_vm1 = vmmov (!%p392_p2), 0   ;;  %v1617_v9 = vld [vmem:[%s1969_s3 + $0x8] sm:$0xff] (!%p392_p2)   ;;  %v477_v12 = vlaneseq (!%p392_p2) }
   0x6   : > { %395 = sbr.rel (%p392_p2) target bundleno = 2582 (0xa16), region = 64  ;;  %1500 = vmatprep.subr.bf16.mxu0 (!%p392_p2), %v1660_v8  ;;  %1504 = vmatprep.mubr.msk.bf16.mxu0 (!%p392_p2), %vm1661_vm1, %v1660_v8  ;;  %v1786_v16 = vld [vmem:[%s1968_s2] sm:$0xf] (!%p392_p2)  ;;  %s1662_s22 = smov (!%p392_p2), 120   ;;  %vm567_vm2 = vcmask (!%p392_p2), 64512   ;;  %vm633_vm4 = vcmask (!%p392_p2), 1043456  }
   0x7   : > { %1501 = vmatpush3.bf16.msra.mxu0 (!%p392_p2), %v1616_v7  ;;  %1520 = vmatprep.subr.bf16.mxu1 (!%p392_p2), %v1660_v8  ;;  %v1780_v14 = vshrl.u32 (!%p392_p2), %v477_v12, 7  ;;  %v1435_v25 = vld [vmem:[%s1970_s4] ss:$0 sm:$0xff] (!%p392_p2)  ;;  %s1663_s23 = smov (!%p392_p2), 96   ;;  %s1664_s24 = smov (!%p392_p2), 88   ;;  %vm1026_vm5 = vcmask (!%p392_p2), 130048  }
   0x8   : > { %1502 = vmatprep.subr.bf16.mxu0 (!%p392_p2), %v1660_v8  ;;  %1522 = vmatprep.mubr.msk.bf16.mxu1 (!%p392_p2), %vm1661_vm1, %v1660_v8  ;;  %s1666_s28 = smov (!%p392_p2), 112   ;;  %s1667_s29 = smov (!%p392_p2), 72   ;;  %v460_v43 = vld [vmem:[%s1967_s1] sm:$0xff] (!%p392_p2)  ;;  %vm1028_vm6 = vcmask (!%p392_p2), 195584  }
   0x9   : > { %v479_v15 = vsub.s32 (!%p392_p2), 0, %v1780_v14  ;;  %v484_v17 = vsub.s32 (!%p392_p2), 1, %v1780_v14  ;;  %vm461_vm3 = vcmp.ne.f32.partialorder (!%p392_p2), %v460_v43, 0.0  ;;  %s1669_s16 = smov (!%p392_p2), 64   ;;  %s1670_s17 = smov (!%p392_p2), 56  }
   0xa   : > { %s1671_s18 = smov (!%p392_p2), 48   ;;  %s1672_s19 = smov (!%p392_p2), 40  }
   0xb   : > { %1503 = vmatpush3.bf16.msra.mxu0 (!%p392_p2), %v1617_v9  ;;  %v480_v18 = vrot.slane (!%p392_p2), %v1786_v16, %v479_v15  ;;  %v485_v21 = vrot.slane (!%p392_p2), %v1786_v16, %v484_v17  ;;  %s1673_s20 = smov (!%p392_p2), 8  }
   0xc   : > { %1508 = vmatprep.subr.bf16.mxu0 (!%p392_p2), %v1660_v8 }
   0xd   : > { %s1981_s26 = smov (!%p441_p3, %s1426_s26), 1 }
   0xe   : > { %s1754_s27 = sshll.u32 %s1981_s26, 3  ;;  %s1665_s26 = smov 80  }
   0xf   : > { %s444_s30 = scalar_lea.vmem %s1966_s0, %s1754_s27 }
  0x10   : > { %v1760_v0 = vld [vmem:[%s444_s30] sm:$0xff]  ;;  %s1668_s30 = smov 104  }
  0x11   : > { %v463_v1 = vsel %vm462_vm0, %v1760_v0, 0.0 }
  0x12   : > { %464 = vadd.xlane.f32.xlu0 %v463_v1 }
  0x9f   : > { %v465_v2 = vpop.xlane.xlu0 %464 }
  0xa0   : > { %v467_v3 = vmul.f32 0.03125, %v465_v2 }
  0xa2   : > { %v468_v4 = vsub.f32 %v1760_v0, %v467_v3 }
  0xa4   : > { %v469_v5 = vmul.f32 %v468_v4, %v468_v4 }
  0xa6   : > { %v470_v6 = vsel %vm462_vm0, %v469_v5, 0.0 }
  0xa7   : > { %471 = vadd.xlane.f32.xlu0 %v470_v6 }
 0x134   : > { %v472_v10 = vpop.xlane.xlu0 %471 }
 0x135   : > { %v473_v11 = vmul.f32 0.03125, %v472_v10 }
 0x137   : > { %v474_v13 = vadd.f32 1e-05, %v473_v11 }
 0x139   : > { %1630 = vrsqrt.f32 %v474_v13 }
 0x143   : > { %v1631_v19 = vpop.eup %1630 }
 0x144   : > { %v476_v20 = vmul.f32 %v1631_v19, %v468_v4 }
 0x146   : > { %v481_v22 = vmul.f32 %v480_v18, %v476_v20 }
 0x148   : > { %v486_v23 = vadd.f32 %v485_v21, %v481_v22 }
 0x14a   : > { %v488_v24 = vpack.c.bf16 %v486_v23, %v486_v23 }
 0x14c   : > { %1505 = vmatmul.mubr.msk.bf16.vlgmr.msra.gmra.mrb[0].mxu0 %vm462_vm0, %v488_v24 }
 0x14d   : > { %1510 = vmatprep.mubr.msk.bf16.mxu0 %vm1661_vm1, %v1660_v8 }
 0x21f   : > { %v548_v26 = vpop.f32.mrb[0].mxu0 }
 0x220   : > { %v1797_v27 = vadd.f32 %v1435_v25, %v548_v26  ;;  %v1506_v28 = vpop.f32.mrb[1].mxu0 }
 0x221   : > { %v551_v29 = vpop.f32.mrb[2].mxu0 }
 0x222   : > { %v1801_v30 = vpack.c.bf16 %v1797_v27, %v1797_v27  ;;  %v1507_v31 = vpop.f32.mrb[3].mxu0 }
 0x224   : > { %677 = vrot.lane.b32.xlu0 %v1801_v30, %s1662_s22  ;;  %565 = vrot.lane.b32.xlu1 %v1801_v30, %s1663_s23 }
 0x228   : > { %679 = vrot.lane.b32.xlu1 %v1801_v30, %s1664_s24 }
 0x22c   : > { %791 = vrot.lane.b32.xlu1 %v1801_v30, %s1665_s26 }
 0x230   : > { %789 = vrot.lane.b32.xlu1 %v1801_v30, %s1666_s28  ;;  %s1674_s28 = smov 16  }
 0x234   : > { %903 = vrot.lane.b32.xlu1 %v1801_v30, %s1667_s29  ;;  %s1675_s29 = smov 24  }
 0x238   : > { %901 = vrot.lane.b32.xlu1 %v1801_v30, %s1668_s30 }
 0x296   : > { %v566_v32 = vpop.permute.xlu1 %565  ;;  %v678_v37 = vpop.permute.xlu0 %677 }
 0x297   : > { %v572_v33 = vsel %vm567_vm2, %v566_v32, 0 }
 0x298   : > { %1509 = vmatpush3.bf16.xpose.msra.mxu0 %v572_v33 }
 0x299   : > { %1514 = vmatprep.subr.bf16.mxu0 %v1660_v8 }
 0x29a   : > { %v680_v34 = vpop.permute.xlu1 %679 }
 0x29b   : > { %v685_v35 = vsel %vm567_vm2, %v680_v34, 0 }
 0x29c   : > { %1521 = vmatpush3.bf16.xpose.msra.mxu1 %v685_v35 }
 0x29d   : > { %1532 = vmatprep.subr.bf16.mxu1 %v1660_v8 }
 0x29e   : > { %v792_v36 = vpop.permute.xlu1 %791 }
 0x29f   : > { %1511 = vmatmul.mubr.msk.bf16.vlgmr.msra.gmra.mrb[4].mxu0 %vm567_vm2, %v1801_v30  ;;  %v797_v39 = vsel %vm567_vm2, %v792_v36, 0 }
 0x2a0   : > { %1516 = vmatprep.mubr.msk.bf16.mxu0 %vm1661_vm1, %v1660_v8 }
 0x2a2   : > { %v790_v38 = vpop.permute.xlu1 %789 }
 0x2a3   : > { %1523 = vmatmul.mubr.msk.bf16.vlgmr.msra.gmra.mrb[0].mxu1 %vm567_vm2, %v678_v37 }
 0x2a4   : > { %1533 = vmatpush3.bf16.xpose.msra.mxu1 %v797_v39  ;;  %1534 = vmatprep.mubr.msk.bf16.mxu1 %vm1661_vm1, %v1660_v8 }
 0x2a5   : > { %1544 = vmatprep.subr.bf16.mxu1 %v1660_v8 }
 0x2a6   : > { %v904_v40 = vpop.permute.xlu1 %903 }
 0x2a7   : > { %v909_v41 = vsel %vm567_vm2, %v904_v40, 0 }
 0x2aa   : > { %v902_v42 = vpop.permute.xlu1 %901 }
 0x2ab   : > { %1535 = vmatmul.mubr.msk.bf16.vlgmr.msra.gmra.mrb[4].mxu1 %vm567_vm2, %v790_v38 }
 0x2ac   : > { %1545 = vmatpush3.bf16.xpose.msra.mxu1 %v909_v41  ;;  %1546 = vmatprep.mubr.msk.bf16.mxu1 %vm1661_vm1, %v1660_v8 }
 0x2ad   : > { %1556 = vmatprep.subr.bf16.mxu1 %v1660_v8 }
 0x2b3   : > { %1547 = vmatmul.mubr.msk.bf16.vlgmr.msra.gmra.mrb[8].mxu1 %vm567_vm2, %v902_v42 }
 0x2b4   : > { %1560 = vmatprep.mubr.msk.bf16.mxu1 %vm1661_vm1, %v1660_v8 }
 0x372   : > { %v608_v44 = vpop.f32.mrb[4].mxu0 }
 0x373   : > { %v614_v45 = vmul.f32 0.35355338, %v608_v44  ;;  %v1512_v46 = vpop.f32.mrb[5].mxu0 }
 0x374   : > { %v611_v47 = vpop.f32.mrb[6].mxu0 }
 0x375   : > { %v1513_v48 = vpop.f32.mrb[7].mxu0  ;;  %v615_v49 = vsel %vm461_vm3, %v614_v45, -10000.0 }
 0x376   : > { %v721_v50 = vpop.f32.mrb[0].mxu1  ;;  %v616_v51 = vsel %vm567_vm2, %v615_v49, -inf }
 0x377   : > { %v727_v52 = vmul.f32 0.35355338, %v721_v50  ;;  %v1524_v53 = vpop.f32.mrb[1].mxu1  ;;  %617 = vmax.xlane.f32.xlu1 %v616_v51 }
 0x378   : > { %v724_v54 = vpop.f32.mrb[2].mxu1 }
 0x379   : > { %v1525_v55 = vpop.f32.mrb[3].mxu1  ;;  %v728_v56 = vsel %vm461_vm3, %v727_v52, -10000.0 }
 0x37a   : > { %v729_v57 = vsel %vm567_vm2, %v728_v56, -inf }
 0x37b   : > { %730 = vmax.xlane.f32.xlu0 %v729_v57 }
 0x37e   : > { %v833_v58 = vpop.f32.mrb[4].mxu1 }
 0x37f   : > { %v839_v59 = vmul.f32 0.35355338, %v833_v58  ;;  %v1536_v60 = vpop.f32.mrb[5].mxu1 }
 0x380   : > { %v836_v61 = vpop.f32.mrb[6].mxu1 }
 0x381   : > { %v1537_v62 = vpop.f32.mrb[7].mxu1  ;;  %v840_v63 = vsel %vm461_vm3, %v839_v59, -10000.0 }
 0x382   : > { %v841_v1 = vsel %vm567_vm2, %v840_v63, -inf }
 0x383   : > { %842 = vmax.xlane.f32.xlu1 %v841_v1 }
 0x386   : > { %v945_v2 = vpop.f32.mrb[8].mxu1 }
 0x387   : > { %v951_v3 = vmul.f32 0.35355338, %v945_v2  ;;  %v1548_v4 = vpop.f32.mrb[9].mxu1  ;;  %v1618_v2 = vld [vmem:[%s1971_s5] sm:$0xff]  }
 0x388   : > { %v948_v5 = vpop.f32.mrb[10].mxu1  ;;  %1557 = vmatpush3.bf16.msra.mxu1 %v1618_v2 }
 0x389   : > { %v1549_v6 = vpop.f32.mrb[11].mxu1  ;;  %v952_v7 = vsel %vm461_vm3, %v951_v3, -10000.0  ;;  %1558 = vmatprep.subr.bf16.mxu1 %v1660_v8  ;;  %v1619_v3 = vld [vmem:[%s1971_s5 + $0x8] sm:$0xff]  }
 0x38a   : > { %v953_v9 = vsel %vm567_vm2, %v952_v7, -inf }
 0x38b   : > { %954 = vmax.xlane.f32.xlu0 %v953_v9 }
 0x38c   : > { %1559 = vmatpush3.bf16.msra.mxu1 %v1619_v3 }
 0x38d   : > { %1572 = vmatprep.subr.bf16.mxu1 %v1660_v8 }
 0x404   : > { %v618_v10 = vpop.xlane.xlu1 %617 }
 0x405   : > { %v619_v11 = vsub.f32 %v615_v49, %v618_v10 }
 0x407   : > { %v620_v12 = vmul.f32 1.442695, %v619_v11 }
 0x408   : > { %v731_v13 = vpop.xlane.xlu0 %730 }
 0x409   : > { %1632 = vpow2.f32 %v620_v12  ;;  %v732_v15 = vsub.f32 %v728_v56, %v731_v13 }
 0x40b   : > { %v733_v17 = vmul.f32 1.442695, %v732_v15 }
 0x40d   : > { %1634 = vpow2.f32 %v733_v17 }
 0x410   : > { %v843_v28 = vpop.xlane.xlu1 %842 }
 0x411   : > { %v844_v29 = vsub.f32 %v840_v63, %v843_v28 }
 0x413   : > { %v1633_v18 = vpop.eup %1632  ;;  %v845_v31 = vmul.f32 1.442695, %v844_v29 }
 0x414   : > { %v622_v19 = vsel %vm567_vm2, %v1633_v18, 0.0 }
 0x415   : > { %623 = vadd.xlane.f32.xlu1 %v622_v19 }
 0x417   : > { %v1635_v20 = vpop.eup %1634 }
 0x418   : > { %v955_v21 = vpop.xlane.xlu0 %954  ;;  %v735_v22 = vsel %vm567_vm2, %v1635_v20, 0.0 }
 0x419   : > { %v956_v23 = vsub.f32 %v952_v7, %v955_v21  ;;  %736 = vadd.xlane.f32.xlu0 %v735_v22  ;;  %v1447_v22 = vld [vmem:[%s1972_s6] ss:$0 sm:$0xff] }
 0x41b   : > { %v957_v24 = vmul.f32 1.442695, %v956_v23 }
 0x41d   : > { %1636 = vpow2.f32 %v957_v24 }
 0x41e   : > { %1638 = vpow2.f32 %v845_v31 }
 0x426   : > { %628 = vrot.lane.b32.xlu1 %v1801_v30, %s1669_s16 }
 0x427   : > { %v1637_v25 = vpop.eup %1636 }
 0x428   : > { %v959_v26 = vsel %vm567_vm2, %v1637_v25, 0.0  ;;  %v1639_v32 = vpop.eup %1638 }
 0x429   : > { %960 = vadd.xlane.f32.xlu0 %v959_v26  ;;  %v847_v33 = vsel %vm567_vm2, %v1639_v32, 0.0 }
 0x43f   : > { %741 = vrot.lane.b32.xlu0 %v1801_v30, %s1670_s17 }
 0x44a   : > { %848 = vadd.xlane.f32.xlu1 %v847_v33 }
 0x45b   : > { %853 = vrot.lane.b32.xlu1 %v1801_v30, %s1671_s18  ;;  %s456_s18 = scalar_lea.vmem %s1979_s13, %s1754_s27 }
 0x45f   : > { %965 = vrot.lane.b32.xlu1 %v1801_v30, %s1672_s19 }
 0x4a2   : > { %v624_v34 = vpop.xlane.xlu1 %623 }
 0x4a3   : > { %1640 = vrcp.f32 %v624_v34 }
 0x4a6   : > { %v629_v35 = vpop.permute.xlu1 %628  ;;  %v737_v37 = vpop.xlane.xlu0 %736 }
 0x4a7   : > { %v635_v36 = vsel %vm633_vm4, %v629_v35, 0  ;;  %1642 = vrcp.f32 %v737_v37  ;;  %v1620_v37 = vld [vmem:[%s1973_s7] sm:$0xff]  }
 0x4a8   : > { %1515 = vmatpush3.bf16.msra.mxu0 %v635_v36 }
 0x4a9   : > { %1526 = vmatprep.subr.bf16.mxu0 %v1660_v8 }
 0x4ad   : > { %v1641_v38 = vpop.eup %1640 }
 0x4ae   : > { %v626_v39 = vmul.f32 %v1641_v38, %v1633_v18  ;;  %v1621_v38 = vld [vmem:[%s1973_s7 + $0x8] sm:$0xff]  }
 0x4b0   : > { %v627_v40 = vpack.c.bf16 %v626_v39, %v626_v39  ;;  %v1622_v39 = vld [vmem:[%s1975_s9] sm:$0xff]  }
 0x4b1   : > { %v1643_v30 = vpop.eup %1642 }
 0x4b2   : > { %1517 = vmatmul.mubr.msk.bf16.vlgmr.msra.gmra.mrb[8].mxu0 %vm567_vm2, %v627_v40  ;;  %v739_v42 = vmul.f32 %v1643_v30, %v1635_v20 }
 0x4b3   : > { %1528 = vmatprep.mubr.msk.bf16.mxu0 %vm1661_vm1, %v1660_v8 }
 0x4b4   : > { %v740_v45 = vpack.c.bf16 %v739_v42, %v739_v42  ;;  %v1113_v42 = vsub.s32 2, %v1780_v14 }
 0x4b6   : > { %v961_v41 = vpop.xlane.xlu0 %960 }
 0x4ba   : > { %v742_v43 = vpop.permute.xlu0 %741 }
 0x4bb   : > { %v747_v44 = vsel %vm633_vm4, %v742_v43, 0  ;;  %v1118_v43 = vsub.s32 3, %v1780_v14  ;;  %v1624_v14 = vld [vmem:[%s1975_s9 + $0x10] sm:$0xff]  }
 0x4bc   : > { %1527 = vmatpush3.bf16.msra.mxu0 %v747_v44  ;;  %v1114_v44 = vrot.slane %v1786_v16, %v1113_v42 }
 0x4bd   : > { %1538 = vmatprep.subr.bf16.mxu0 %v1660_v8 }
 0x4bf   : > { %1529 = vmatmul.mubr.msk.bf16.vlgmr.msra.gmra.mrb[12].mxu0 %vm567_vm2, %v740_v45 }
 0x4c0   : > { %1540 = vmatprep.mubr.msk.bf16.mxu0 %vm1661_vm1, %v1660_v8 }
 0x4d7   : > { %v849_v46 = vpop.xlane.xlu1 %848 }
 0x4d8   : > { %1644 = vrcp.f32 %v849_v46 }
 0x4d9   : > { %1646 = vrcp.f32 %v961_v41 }
 0x4db   : > { %v854_v47 = vpop.permute.xlu1 %853 }
 0x4dc   : > { %v859_v48 = vsel %vm633_vm4, %v854_v47, 0  ;;  %v1119_v47 = vrot.slane %v1786_v16, %v1118_v43  ;;  %v1625_v16 = vld [vmem:[%s1975_s9 + $0x18] sm:$0xff]  }
 0x4dd   : > { %1539 = vmatpush3.bf16.msra.mxu0 %v859_v48 }
 0x4de   : > { %1550 = vmatprep.subr.bf16.mxu0 %v1660_v8 }
 0x4df   : > { %v966_v51 = vpop.permute.xlu1 %965 }
 0x4e0   : > { %v971_v54 = vsel %vm633_vm4, %v966_v51, 0  ;;  %v1623_v51 = vld [vmem:[%s1975_s9 + $0x8] sm:$0xff]  }
 0x4e2   : > { %v1645_v49 = vpop.eup %1644 }
 0x4e3   : > { %v851_v50 = vmul.f32 %v1645_v49, %v1639_v32  ;;  %v1647_v53 = vpop.eup %1646 }
 0x4e4   : > { %v963_v55 = vmul.f32 %v1647_v53, %v1637_v25  ;;  %v1627_v53 = vld [vmem:[%s1975_s9 + $0x28] sm:$0xff]  }
 0x4e5   : > { %v852_v52 = vpack.c.bf16 %v851_v50, %v851_v50 }
 0x4e6   : > { %v964_v56 = vpack.c.bf16 %v963_v55, %v963_v55  ;;  %v1629_v55 = vld [vmem:[%s1975_s9 + $0x38] sm:$0xff]  }
 0x4e7   : > { %1541 = vmatmul.mubr.msk.bf16.vlgmr.msra.gmra.mrb[16].mxu0 %vm567_vm2, %v852_v52  ;;  %v1626_v52 = vld [vmem:[%s1975_s9 + $0x20] sm:$0xff]  }
 0x4e8   : > { %1551 = vmatpush3.bf16.msra.mxu0 %v971_v54  ;;  %1552 = vmatprep.mubr.msk.bf16.mxu0 %vm1661_vm1, %v1660_v8  ;;  %v1628_v54 = vld [vmem:[%s1975_s9 + $0x30] sm:$0xff]  }
 0x4e9   : > { %1564 = vmatprep.subr.bf16.mxu0 %v1660_v8 }
 0x4ef   : > { %1553 = vmatmul.mubr.msk.bf16.vlgmr.msra.gmra.mrb[20].mxu0 %vm567_vm2, %v964_v56  ;;  %v1451_v56 = vld [vmem:[%s1974_s8] ss:$0 sm:$0xff] }
 0x4f0   : > { %1568 = vmatprep.mubr.msk.bf16.mxu0 %vm1661_vm1, %v1660_v8  ;;  %1565 = vmatpush3.bf16.msra.mxu0 %v1620_v37 }
 0x4f1   : > { %1566 = vmatprep.subr.bf16.mxu0 %v1660_v8 }
 0x4f4   : > { %1567 = vmatpush3.bf16.msra.mxu0 %v1621_v38 }
 0x585   : > { %v671_v57 = vpop.f32.mrb[8].mxu0 }
 0x586   : > { %v1518_v58 = vpop.f32.mrb[9].mxu0 }
 0x587   : > { %v674_v59 = vpop.f32.mrb[10].mxu0 }
 0x588   : > { %v1519_v60 = vpop.f32.mrb[11].mxu0 }
 0x592   : > { %v783_v61 = vpop.f32.mrb[12].mxu0 }
 0x593   : > { %1014 = vrot.lane.b32.xlu0 %v783_v61, %s1673_s20  ;;  %v1530_v62 = vpop.f32.mrb[13].mxu0 }
 0x594   : > { %v786_v63 = vpop.f32.mrb[14].mxu0 }
 0x595   : > { %v1531_v1 = vpop.f32.mrb[15].mxu0 }
 0x5ba   : > { %v895_v4 = vpop.f32.mrb[16].mxu0 }
 0x5bb   : > { %1018 = vrot.lane.b32.xlu1 %v895_v4, %s1674_s28  ;;  %v1542_v5 = vpop.f32.mrb[17].mxu0  ;;  %s452_s28 = scalar_lea.vmem %s1978_s12, %s1754_s27 }
 0x5bc   : > { %v898_v6 = vpop.f32.mrb[18].mxu0 }
 0x5bd   : > { %v1543_v7 = vpop.f32.mrb[19].mxu0 }
 0x5c2   : > { %v1007_v9 = vpop.f32.mrb[20].mxu0 }
 0x5c3   : > { %1022 = vrot.lane.b32.xlu0 %v1007_v9, %s1675_s29  ;;  %v1554_v10 = vpop.f32.mrb[21].mxu0  ;;  %v1455_v9 = vld [vmem:[%s1976_s10] ss:$0 sm:$0xff] }
 0x5c4   : > { %v1010_v11 = vpop.f32.mrb[22].mxu0 }
 0x5c5   : > { %v1555_v12 = vpop.f32.mrb[23].mxu0 }
 0x605   : > { %v1015_v13 = vpop.permute.xlu0 %1014 }
 0x606   : > { %v1025_v17 = vsel %vm567_vm2, %v671_v57, %v1015_v13 }
 0x62d   : > { %v1019_v15 = vpop.permute.xlu1 %1018 }
 0x62e   : > { %v1027_v18 = vsel %vm1026_vm5, %v1025_v17, %v1019_v15 }
 0x635   : > { %v1023_v19 = vpop.permute.xlu0 %1022 }
 0x636   : > { %v1029_v20 = vsel %vm1028_vm6, %v1027_v18, %v1023_v19 }
 0x637   : > { %v1031_v21 = vpack.c.bf16 %v1029_v20, %v1029_v20 }
 0x639   : > { %1561 = vmatmul.mubr.msk.bf16.vlgmr.msra.gmra.mrb[12].mxu1 %vm462_vm0, %v1031_v21 }
 0x63a   : > { %1588 = vmatprep.mubr.msk.bf16.mxu1 %vm1661_vm1, %v1660_v8  ;;  %1573 = vmatpush3.bf16.msra.mxu1 %v1622_v39 }
 0x63b   : > { %1574 = vmatprep.subr.bf16.mxu1 %v1660_v8 }
 0x63e   : > { %1575 = vmatpush3.bf16.msra.mxu1 %v1623_v51 }
 0x63f   : > { %1576 = vmatprep.subr.bf16.mxu1 %v1660_v8 }
 0x642   : > { %1577 = vmatpush3.bf16.msra.mxu1 %v1624_v14 }
 0x643   : > { %1578 = vmatprep.subr.bf16.mxu1 %v1660_v8 }
 0x646   : > { %1579 = vmatpush3.bf16.msra.mxu1 %v1625_v16 }
 0x647   : > { %1580 = vmatprep.subr.bf16.mxu1 %v1660_v8 }
 0x64a   : > { %1581 = vmatpush3.bf16.msra.mxu1 %v1626_v52 }
 0x64b   : > { %1582 = vmatprep.subr.bf16.mxu1 %v1660_v8 }
 0x64e   : > { %1583 = vmatpush3.bf16.msra.mxu1 %v1627_v53 }
 0x64f   : > { %1584 = vmatprep.subr.bf16.mxu1 %v1660_v8 }
 0x652   : > { %1585 = vmatpush3.bf16.msra.mxu1 %v1628_v54 }
 0x653   : > { %1586 = vmatprep.subr.bf16.mxu1 %v1660_v8 }
 0x656   : > { %1587 = vmatpush3.bf16.msra.mxu1 %v1629_v55 }
 0x70c   : > { %v1091_v23 = vpop.f32.mrb[12].mxu1 }
 0x70d   : > { %v1092_v24 = vadd.f32 %v1447_v22, %v1091_v23  ;;  %v1562_v25 = vpop.f32.mrb[13].mxu1 }
 0x70e   : > { %v1094_v26 = vpop.f32.mrb[14].mxu1 }
 0x70f   : > { %v1888_v28 = vadd.f32 %v1092_v24, %v1760_v0  ;;  %v1563_v29 = vpop.f32.mrb[15].mxu1 }
 0x711   : > { %v1098_v31 = vsel %vm462_vm0, %v1888_v28, 0.0 }
 0x712   : > { %1099 = vadd.xlane.f32.xlu1 %v1098_v31 }
 0x723   : > { %559 = vrot.lane.b32.xlu1 %v1797_v27, %s1669_s16 }
 0x79f   : > { %v1100_v32 = vpop.xlane.xlu1 %1099 }
 0x7a0   : > { %v1101_v33 = vmul.f32 0.03125, %v1100_v32 }
 0x7a2   : > { %v1102_v34 = vsub.f32 %v1888_v28, %v1101_v33 }
 0x7a3   : > { %v560_v35 = vpop.permute.xlu1 %559 }
 0x7a4   : > { %562 = vst.msk [vmem:[%s456_s18] sm:$0xff] %vm462_vm0, %v560_v35  ;;  %v1103_v0 = vmul.f32 %v1102_v34, %v1102_v34  ;;  %s448_s18 = scalar_lea.vmem %s1977_s11, %s1754_s27 }
 0x7a6   : > { %v1104_v36 = vsel %vm462_vm0, %v1103_v0, 0.0 }
 0x7a7   : > { %1105 = vadd.xlane.f32.xlu0 %v1104_v36 }
 0x7bd   : > { %555 = vrot.lane.b32.xlu0 %v1797_v27, %s1663_s23 }
 0x834   : > { %v1106_v27 = vpop.xlane.xlu0 %1105 }
 0x835   : > { %v1107_v40 = vmul.f32 0.03125, %v1106_v27 }
 0x837   : > { %v1108_v30 = vadd.f32 1e-05, %v1107_v40 }
 0x838   : > { %v556_v41 = vpop.permute.xlu0 %555 }
 0x839   : > { %1648 = vrsqrt.f32 %v1108_v30  ;;  %558 = vst.msk [vmem:[%s452_s28] sm:$0xff] %vm462_vm0, %v556_v41 }
 0x843   : > { %v1649_v45 = vpop.eup %1648 }
 0x844   : > { %v1110_v46 = vmul.f32 %v1649_v45, %v1102_v34 }
 0x846   : > { %v1115_v48 = vmul.f32 %v1114_v44, %v1110_v46 }
 0x848   : > { %v1120_v49 = vadd.f32 %v1119_v47, %v1115_v48 }
 0x84a   : > { %v1122_v50 = vpack.c.bf16 %v1120_v49, %v1120_v49 }
 0x84c   : > { %1569 = vmatmul.mubr.msk.bf16.vlgmr.msra.gmra.mrb[24].mxu0 %vm462_vm0, %v1122_v50 }
 0x91f   : > { %v1182_v57 = vpop.f32.mrb[24].mxu0 }
 0x920   : > { %v1183_v58 = vadd.f32 %v1451_v56, %v1182_v57  ;;  %v1570_v59 = vpop.f32.mrb[25].mxu0 }
 0x921   : > { %v1185_v60 = vpop.f32.mrb[26].mxu0 }
 0x922   : > { %v1189_v61 = vmul.f32 0.044715, %v1183_v58  ;;  %v1571_v62 = vpop.f32.mrb[27].mxu0  ;;  %v1188_v5 = vmul.f32 0.5, %v1183_v58 }
 0x924   : > { %v1190_v63 = vmul.f32 %v1189_v61, %v1183_v58 }
 0x926   : > { %v1191_v1 = vmul.f32 %v1190_v63, %v1183_v58 }
 0x928   : > { %v1192_v2 = vadd.f32 %v1191_v1, %v1183_v58 }
 0x92a   : > { %v1193_v3 = vmul.f32 0.7978846, %v1192_v2 }
 0x92c   : > { %1650 = vtanh.f32 %v1193_v3 }
 0x936   : > { %v1651_v4 = vpop.eup %1650 }
 0x937   : > { %v1195_v8 = vadd.f32 1.0, %v1651_v4 }
 0x939   : > { %v1196_v6 = vmul.f32 %v1195_v8, %v1188_v5 }
 0x93b   : > { %v1198_v7 = vpack.c.bf16 %v1196_v6, %v1196_v6 }
 0x93d   : > { %1589 = vmatmul.mubr.bf16.vlgmr.msra.gmra.mrb[16].mxu1 %v1198_v7 }
 0xa10   : > { %v1303_v10 = vpop.f32.mrb[16].mxu1 }
 0xa11   : > { %v1304_v11 = vadd.f32 %v1455_v9, %v1303_v10  ;;  %v1590_v12 = vpop.f32.mrb[17].mxu1 }
 0xa12   : > { %v1306_v13 = vpop.f32.mrb[18].mxu1 }
 0xa13   : > { %v1309_v15 = vadd.f32 %v1304_v11, %v1888_v28  ;;  %v1591_v17 = vpop.f32.mrb[19].mxu1 }
 0xa15   : > { %1310 = vst.msk [vmem:[%s448_s18] sm:$0xff] %vm462_vm0, %v1309_v15 }
 0xa16 PF: > { %s24_s25 = sadd.s32 1, %s1658_s25  }
 0xa17   : > { %p21_p4 = scmp.ge.s32.totalorder %s24_s25, 4  }
 0xa19   :  { %23 = sbr.rel (!%p21_p4) target bundleno = 1 (0x1), region = 118 }

</bundles_post_ra>
